<compile_context>
chip_gen: v7x
topology: tpu7x:2x2x1
jax: 0.10.0
libtpu: 0.0.40
codegen_flags: <defaults>
</compile_context>

<pallas_src>
import jax
import jax.numpy as jnp
from jax.experimental import pallas as pl
from jax.experimental.pallas import tpu as pltpu


def _round_up(v, m):
    return (v + m - 1) // m * m


# ---------------------------------------------------------------------------
# Kernel A: K axis collapsed (full d_in strip resident in VMEM).
# One MXU pass per (i, j) output tile; bias folded into the single store.
# ---------------------------------------------------------------------------
def _linear_kernel_fullk(x_ref, w_ref, b_ref, o_ref):
    acc = jnp.dot(x_ref[...], w_ref[...], preferred_element_type=jnp.float32)
    o_ref[...] = (acc + b_ref[...].astype(jnp.float32)).astype(o_ref.dtype)


# ---------------------------------------------------------------------------
# Kernel B: K-tiled fallback for very large d_in.  Accumulator is initialized
# with the broadcast bias at k == 0 (no extra epilogue add).
# ---------------------------------------------------------------------------
def _linear_kernel_ktiled(x_ref, w_ref, b_ref, o_ref, acc_ref):
    k = pl.program_id(2)

    @pl.when(k == 0)
    def _():
        acc_ref[...] = jnp.broadcast_to(
            b_ref[...].astype(jnp.float32), acc_ref.shape
        )

    acc_ref[...] += jnp.dot(
        x_ref[...], w_ref[...], preferred_element_type=jnp.float32
    )

    @pl.when(k == pl.num_programs(2) - 1)
    def _():
        o_ref[...] = acc_ref[...].astype(o_ref.dtype)


def hooked_linear(x, W, b, *, tm=256, tn=512, tk=512,
                  vmem_budget_bytes=32 * 1024 * 1024):
    """batch_addmm(b, W, x): (batch, pos, d_in) @ (d_in, d_out) + (d_out,)."""
    batch, pos, d_in = x.shape
    d_in_w, d_out = W.shape
    assert d_in == d_in_w, (d_in, d_in_w)
    assert b.shape == (d_out,)

    M = batch * pos
    x2d = x.reshape(M, d_in)

    # ---- tile sizing: clamp to the (padded) problem, keep (8,128)-aligned ---
    tm = min(tm, _round_up(M, 8))            # multiple of 8 (sublane)
    tn = min(tn, _round_up(d_out, 128))      # multiple of 128 (lane)

    itemsize = jnp.dtype(x.dtype).itemsize

    # Can a full-K strip (x tile + W strip, double-buffered, + output tile)
    # live within the VMEM budget?  If so, drop the reduction grid axis.
    fullk_bytes = (2 * (tm * d_in + d_in * tn) * itemsize
                   + 2 * tm * tn * itemsize)
    use_fullk = fullk_bytes <= vmem_budget_bytes

    # ---- pad to tile multiples (lane-dense stores; zero-padded reduction) ---
    Mp = _round_up(M, tm)
    Np = _round_up(d_out, tn)
    if use_fullk:
        Kp = d_in
    else:
        tk = min(tk, _round_up(d_in, 128))   # multiple of 128
        Kp = _round_up(d_in, tk)

    if (Mp, Kp) != (M, d_in):
        x2d = jnp.pad(x2d, ((0, Mp - M), (0, Kp - d_in)))
    Wp = W
    if (Kp, Np) != (d_in, d_out):
        Wp = jnp.pad(W, ((0, Kp - d_in), (0, Np - d_out)))
    b2d = b.reshape(1, d_out)
    if Np != d_out:
        b2d = jnp.pad(b2d, ((0, 0), (0, Np - d_out)))

    cost = pl.CostEstimate(
        flops=2 * M * d_in * d_out,
        transcendentals=0,
        bytes_accessed=(M * d_in + d_in * d_out + d_out + M * d_out) * itemsize,
    )

    n_m, n_n = Mp // tm, Np // tn

    if use_fullk:
        # Choose grid order that minimizes replicated HBM reads:
        #   i-outer (j inner): W is re-read n_m times   -> n_m * Kp * Np bytes
        #   j-outer (i inner): x is re-read n_n times   -> n_n * Mp * Kp bytes
        i_outer = (n_m * Kp * Np) <= (n_n * Mp * Kp)
        if i_outer:
            grid = (n_m, n_n)
            x_map = lambda i, j: (i, 0)
            w_map = lambda i, j: (0, j)
            b_map = lambda i, j: (0, j)
            o_map = lambda i, j: (i, j)
        else:
            grid = (n_n, n_m)
            x_map = lambda j, i: (i, 0)
            w_map = lambda j, i: (0, j)
            b_map = lambda j, i: (0, j)
            o_map = lambda j, i: (i, j)

        out2d = pl.pallas_call(
            _linear_kernel_fullk,
            out_shape=jax.ShapeDtypeStruct((Mp, Np), x.dtype),
            grid_spec=pltpu.PrefetchScalarGridSpec(
                num_scalar_prefetch=0,
                grid=grid,
                in_specs=[
                    pl.BlockSpec((tm, Kp), x_map),   # x strip
                    pl.BlockSpec((Kp, tn), w_map),   # W strip
                    pl.BlockSpec((1, tn), b_map),    # bias
                ],
                out_specs=pl.BlockSpec((tm, tn), o_map),
            ),
            compiler_params=pltpu.CompilerParams(
                dimension_semantics=("parallel", "parallel"),
                vmem_limit_bytes=64 * 1024 * 1024,
            ),
            cost_estimate=cost,
        )(x2d, Wp, b2d)
    else:
        grid = (n_m, n_n, Kp // tk)
        out2d = pl.pallas_call(
            _linear_kernel_ktiled,
            out_shape=jax.ShapeDtypeStruct((Mp, Np), x.dtype),
            grid_spec=pltpu.PrefetchScalarGridSpec(
                num_scalar_prefetch=0,
                grid=grid,
                in_specs=[
                    pl.BlockSpec((tm, tk), lambda i, j, k: (i, k)),  # x tile
                    pl.BlockSpec((tk, tn), lambda i, j, k: (k, j)),  # W tile
                    pl.BlockSpec((1, tn), lambda i, j, k: (0, j)),   # bias
                ],
                out_specs=pl.BlockSpec((tm, tn), lambda i, j, k: (i, j)),
                scratch_shapes=[pltpu.VMEM((tm, tn), jnp.float32)],
            ),
            compiler_params=pltpu.CompilerParams(
                dimension_semantics=("parallel", "parallel", "arbitrary"),
                vmem_limit_bytes=64 * 1024 * 1024,
            ),
            cost_estimate=cost,
        )(x2d, Wp, b2d)

    return out2d[:M, :d_out].reshape(batch, pos, d_out)


if __name__ == "__main__":
    # Small shapes implied by the module: x[batch, pos, d_model]
    batch, pos, size_in, size_out = 2, 8, 256, 128
    dtype = jnp.float32

    key = jax.random.PRNGKey(0)
    kx, kw = jax.random.split(key)
    x = jax.random.normal(kx, (batch, pos, size_in), dtype=dtype)
    # torch.empty is uninitialized -> initialize deterministically here.
    W = (jax.random.normal(kw, (size_in, size_out), dtype=dtype)
         / jnp.sqrt(jnp.float32(size_in))).astype(dtype)
    b = jnp.zeros((size_out,), dtype=dtype)  # nn.Parameter(torch.zeros(...))
    # TODO(synk): HookPoint is an identity pass-through at inference; no kernel work needed.

    ref = jnp.einsum("bpd,do->bpo", x, W) + b

    # Default (K-collapsed) path.
    out = jax.block_until_ready(hooked_linear(x, W, b))
    assert out.shape == (batch, pos, size_out)
    assert jnp.allclose(out, ref, atol=1e-4, rtol=1e-4)

    # Exercise the K-tiled fallback path as well (forced via a tiny budget).
    out_kt = jax.block_until_ready(hooked_linear(x, W, b, vmem_budget_bytes=1))
    assert jnp.allclose(out_kt, ref, atol=1e-4, rtol=1e-4)

    print("KERNEL_OK")
</pallas_src>

<mosaic_0001>
module attributes {stable_mosaic.version = 11 : i64} {
  func.func @_linear_kernel_fullk(%arg0: i32, %arg1: i32, %arg2: memref<16x256xf32, #tpu.memory_space<vmem>>, %arg3: memref<256x128xf32, #tpu.memory_space<vmem>>, %arg4: memref<1x128xf32, #tpu.memory_space<vmem>>, %arg5: memref<16x128xf32, #tpu.memory_space<vmem>>) attributes {dimension_semantics = [#tpu.dimension_semantics<parallel>, #tpu.dimension_semantics<parallel>], iteration_bounds = array<i64: 1, 1>, scalar_prefetch = 0 : i64, scratch_operands = 0 : i64, tpu.core_type = #tpu.core_type<tc>, window_params = [{transform_indices = @transform_0, window_bounds = array<i64: 16, 256>}, {transform_indices = @transform_1, window_bounds = array<i64: 256, 128>}, {transform_indices = @transform_2, window_bounds = array<i64: 1, 128>}, {transform_indices = @transform_3, window_bounds = array<i64: 16, 128>}]} {
    %c0 = arith.constant 0 : index
    %c0_0 = arith.constant 0 : index
    %0 = vector.load %arg2[%c0, %c0_0] : memref<16x256xf32, #tpu.memory_space<vmem>>, vector<16x256xf32>
    %c0_1 = arith.constant 0 : index
    %c0_2 = arith.constant 0 : index
    %1 = vector.load %arg3[%c0_1, %c0_2] : memref<256x128xf32, #tpu.memory_space<vmem>>, vector<256x128xf32>
    %cst = arith.constant dense<0.000000e+00> : vector<16x128xf32>
    %2 = tpu.matmul %0, %1, %cst {dimension_numbers = #tpu.dot_dimension_numbers<[1], [0], [0], [1], [0, 0, 1, 1], [], []>} : vector<16x256xf32>, vector<256x128xf32>, vector<16x128xf32> -> vector<16x128xf32>
    %c0_3 = arith.constant 0 : index
    %c0_4 = arith.constant 0 : index
    %3 = vector.load %arg4[%c0_3, %c0_4] : memref<1x128xf32, #tpu.memory_space<vmem>>, vector<1x128xf32>
    %4 = vector.broadcast %3 : vector<1x128xf32> to vector<16x128xf32>
    %5 = arith.addf %2, %4 : vector<16x128xf32>
    %c0_5 = arith.constant 0 : index
    %c0_6 = arith.constant 0 : index
    %6 = vector.load %arg5[%c0_5, %c0_6] : memref<16x128xf32, #tpu.memory_space<vmem>>, vector<16x128xf32>
    tpu.vector_store %arg5[%c0_5, %c0_6], %5 {strides = array<i32>} : memref<16x128xf32, #tpu.memory_space<vmem>>, vector<16x128xf32>,
    return
  }
  func.func @transform_0(%arg0: i32, %arg1: i32) -> (i32, i32) {
    %c0_i32 = arith.constant 0 : i32
    %c0_i32_0 = arith.constant 0 : i32
    return %arg1, %c0_i32 : i32, i32
  }
  func.func @transform_1(%arg0: i32, %arg1: i32) -> (i32, i32) {
    %c0_i32 = arith.constant 0 : i32
    %c0_i32_0 = arith.constant 0 : i32
    return %c0_i32, %arg0 : i32, i32
  }
  func.func @transform_2(%arg0: i32, %arg1: i32) -> (i32, i32) {
    %c0_i32 = arith.constant 0 : i32
    %c0_i32_0 = arith.constant 0 : i32
    return %c0_i32, %arg0 : i32, i32
  }
  func.func @transform_3(%arg0: i32, %arg1: i32) -> (i32, i32) {
    %c0_i32 = arith.constant 0 : i32
    return %arg1, %arg0 : i32, i32
  }
}

</mosaic_0001>

<bundles_post_ra>
// kernel: tpu_custom_call.1
= control target key start
LH: loop header
LB: loop body
LE: loop exit
PB: predicated region body
PF: predicated region fallthrough
CT: control target
= control target key end

     0   :  { %8 = vsyncpa [#allocation3], 0  ;;  %s463_s0 = inlined_call_operand.hbm [shape: f32[16,256], index: 0, kind: input, shape index: {}]   ;;  %s464_s1 = inlined_call_operand.hbm [shape: f32[256,128], index: 1, kind: input, shape index: {}]   ;;  %s465_s2 = inlined_call_operand.hbm [shape: f32[1,128], index: 2, kind: input, shape index: {}]   ;;  %s466_s3 = inlined_call_operand.hbm [shape: f32[16,128], index: 3, kind: output, shape index: {}]  }
   0x1   :  { %9 = vsyncpa [#allocation6], 0 }
   0x2   :  { %10 = vsyncpa [#allocation4], 0  ;;  %s381_s12 = smov [#allocation5]   ;;  %s287_s16 = scalar_lea.hbm %s464_s1, 4096 }
   0x3   :  { %s28_s13 = sshll.u32 %s381_s12, 4  ;;  %p288_p0 = scmp.ne.s32.totalorder %s464_s1, %s287_s16  ;;  %s29_s13 = int_to_ptr.vmem [resolvable:$true] %s28_s13 }
   0x4   :  { %p291_p1 = scmp.lt.u32.totalorder %s287_s16, %s464_s1 }
   0x6   :  { %p293_p2 = pnand %p291_p1, %p288_p0 }
   0x8   :  { %296 = shalt.err (!%p293_p2)
}
   0x9   :  { %s297_s21 = scalar_lea.vmem %s29_s13, 4096  ;;  %p302_p4 = scmp.lt.s32.totalorder %s29_s13, %s29_s13 }
   0xa   :  { %p298_p3 = scmp.ne.s32.totalorder %s29_s13, %s297_s21  ;;  %p303_p5 = scmp.lt.s32.totalorder %s297_s21, %s297_s21 }
   0xc   :  { %p304_p6 = por %p303_p5, %p302_p4 }
   0xe   :  { %p305_p7 = pnand %p304_p6, %p298_p3 }
  0x10   :  { %308 = shalt.err (!%p305_p7)
}
  0x11   :  { %s382_s22 = smov 128   ;;  %s383_s23 = smov 8  }
  0x12   :  { %34 = dma.hbm_to_vmem [thread:$0]  %s464_s1, 4096, %s29_s13, [#allocation6], %s382_s22, %s382_s22, %s383_s23  }
  0x13   :  { %s384_s26 = smov [#allocation2]   ;;  %s309_s30 = scalar_lea.hbm %s463_s0, 512 }
  0x14   :  { %s16_s27 = sshll.u32 %s384_s26, 4  ;;  %p310_p8 = scmp.ne.s32.totalorder %s463_s0, %s309_s30  ;;  %s17_s27 = int_to_ptr.vmem [resolvable:$true] %s16_s27 }
  0x15   :  { %p313_p9 = scmp.lt.u32.totalorder %s309_s30, %s463_s0 }
  0x17   :  { %p315_p10 = pnand %p313_p9, %p310_p8 }
  0x19   :  { %318 = shalt.err (!%p315_p10)
}
  0x1a   :  { %s319_s8 = scalar_lea.vmem %s17_s27, 512  ;;  %p324_p12 = scmp.lt.s32.totalorder %s17_s27, %s17_s27 }
  0x1b   :  { %p320_p11 = scmp.ne.s32.totalorder %s17_s27, %s319_s8  ;;  %p325_p13 = scmp.lt.s32.totalorder %s319_s8, %s319_s8 }
  0x1d   :  { %p326_p0 = por %p325_p13, %p324_p12 }
  0x1f   :  { %p327_p1 = pnand %p326_p0, %p320_p11 }
  0x21   :  { %330 = shalt.err (!%p327_p1)
}
  0x22   :  { %s385_s1 = smov 256   ;;  %s386_s9 = smov 16  }
  0x23   :  { %22 = dma.hbm_to_vmem [thread:$0]  %s463_s0, 512, %s17_s27, [#allocation3], %s385_s1, %s385_s1, %s386_s9  }
  0x24   :  { %s387_s12 = smov [#allocation7]   ;;  %s331_s16 = scalar_lea.hbm %s465_s2, 16 }
  0x25   :  { %s41_s13 = sshll.u32 %s387_s12, 4  ;;  %p332_p2 = scmp.ne.s32.totalorder %s465_s2, %s331_s16  ;;  %s42_s13 = int_to_ptr.vmem [resolvable:$true] %s41_s13 }
  0x26   :  { %p335_p3 = scmp.lt.u32.totalorder %s331_s16, %s465_s2 }
  0x28   :  { %p337_p4 = pnand %p335_p3, %p332_p2 }
  0x2a   :  { %340 = shalt.err (!%p337_p4)
}
  0x2b   :  { %s341_s21 = scalar_lea.vmem %s42_s13, 16  ;;  %s345_s0 = scalar_lea.vmem %s42_s13, 32 }
  0x2c   :  { %p342_p5 = scmp.ne.s32.totalorder %s42_s13, %s341_s21  ;;  %p346_p6 = scmp.lt.s32.totalorder %s42_s13, %s42_s13 }
  0x2d   :  { %p347_p7 = scmp.lt.s32.totalorder %s345_s0, %s341_s21 }
  0x2f   :  { %p348_p8 = por %p347_p7, %p346_p6 }
  0x31   :  { %p349_p9 = pnand %p348_p8, %p342_p5 }
  0x33   :  { %352 = shalt.err (!%p349_p9)
}
  0x34   :  { %44 = dma.hbm_to_vmem [thread:$0]  %s465_s2, 16, %s42_s13, [#allocation6]  }
  0x35   :  { %375 = dma.done.wait [#allocation3], 512  }
  0x36   :  { %376 = vsyncadd [#allocation3], 4294966784 }
  0x37   :  { %377 = dma.done.wait [#allocation6], 4112  }
  0x38   :  { %378 = vsyncadd [#allocation6], 4294963184  ;;  %v74_v0 = vld [vmem:[#allocation5 + $0x80] sm:$0xff]  ;;  %v75_v1 = vld [vmem:[#allocation5 + $0x88] sm:$0xff]  ;;  %s388_s2 = smov [#allocation8]  }
  0x39   :  { %v58_v2 = vld [vmem:[#allocation5] sm:$0xff]  ;;  %v231_v3 = vpack.c.bf16 %v75_v1, %v74_v0  ;;  %v59_v4 = vld [vmem:[#allocation5 + $0x8] sm:$0xff]  ;;  %v76_v5 = vld [vmem:[#allocation5 + $0x90] sm:$0xff]  ;;  %s179_s26 = sshll.u32 %s388_s2, 4  ;;  %s180_s26 = int_to_ptr.vmem [resolvable:$true] %s179_s26 }
  0x3a   :  { %v77_v6 = vld [vmem:[#allocation5 + $0x98] sm:$0xff]  ;;  %v233_v7 = vpack.c.bf16 %v59_v4, %v58_v2  ;;  %v60_v9 = vld [vmem:[#allocation5 + $0x10] sm:$0xff]  ;;  %v78_v11 = vld [vmem:[#allocation5 + $0xa0] sm:$0xff]  ;;  %s353_s27 = scalar_lea.vmem %s180_s26, 256  ;;  %p358_p11 = scmp.lt.s32.totalorder %s180_s26, %s180_s26 }
  0x3b   :  { %v235_v8 = vpack.c.bf16 %v77_v6, %v76_v5  ;;  %v61_v10 = vld [vmem:[#allocation5 + $0x18] sm:$0xff]  ;;  %232 = vmatprep.subr.bf16.mxu0 %v231_v3  ;;  %263 = vmatprep.subr.bf16.mxu1 %v231_v3  ;;  %v79_v12 = vld [vmem:[#allocation5 + $0xa8] sm:$0xff]  ;;  %v62_v15 = vld [vmem:[#allocation5 + $0x20] sm:$0xff]  ;;  %p354_p10 = scmp.ne.s32.totalorder %s180_s26, %s353_s27  ;;  %p359_p12 = scmp.lt.s32.totalorder %s353_s27, %s353_s27 }
  0x3c   :  { %234 = vmatpush3.bf16.msra.mxu0 %v233_v7  ;;  %271 = vmatpush3.bf16.msra.mxu1 %v233_v7  ;;  %v237_v13 = vpack.c.bf16 %v61_v10, %v60_v9  ;;  %v239_v14 = vpack.c.bf16 %v79_v12, %v78_v11  ;;  %v63_v16 = vld [vmem:[#allocation5 + $0x28] sm:$0xff]  ;;  %v80_v17 = vld [vmem:[#allocation5 + $0xb0] sm:$0xff]  ;;  %v81_v18 = vld [vmem:[#allocation5 + $0xb8] sm:$0xff] }
  0x3d   :  { %236 = vmatprep.subr.bf16.mxu0 %v235_v8  ;;  %264 = vmatprep.subr.bf16.mxu1 %v235_v8  ;;  %v241_v19 = vpack.c.bf16 %v63_v16, %v62_v15  ;;  %v243_v20 = vpack.c.bf16 %v81_v18, %v80_v17  ;;  %v64_v21 = vld [vmem:[#allocation5 + $0x30] sm:$0xff]  ;;  %v65_v22 = vld [vmem:[#allocation5 + $0x38] sm:$0xff]  ;;  %v82_v23 = vld [vmem:[#allocation5 + $0xc0] sm:$0xff]  ;;  %p360_p13 = por %p359_p12, %p358_p11 }
  0x3e   :  { %v83_v24 = vld [vmem:[#allocation5 + $0xc8] sm:$0xff]  ;;  %v57_v26 = vld [vmem:[#allocation2 + $0x18] sm:$0xff]  ;;  %v245_v27 = vpack.c.bf16 %v65_v22, %v64_v21  ;;  %v66_v29 = vld [vmem:[#allocation5 + $0x40] sm:$0xff] }
  0x3f   :  { %v55_v25 = vld [vmem:[#allocation2 + $0x8] sm:$0xff]  ;;  %v247_v28 = vpack.c.bf16 %v83_v24, %v82_v23  ;;  %v84_v31 = vld [vmem:[#allocation5 + $0xd0] sm:$0xff]  ;;  %v85_v32 = vld [vmem:[#allocation5 + $0xd8] sm:$0xff]  ;;  %166 = vmatprep.mubr.f32.mxu1 %v57_v26  ;;  %p361_p0 = pnand %p360_p13, %p354_p10 }
  0x40   :  { %238 = vmatpush3.bf16.msra.mxu0 %v237_v13  ;;  %272 = vmatpush3.bf16.msra.mxu1 %v237_v13  ;;  %v67_v30 = vld [vmem:[#allocation5 + $0x48] sm:$0xff]  ;;  %v251_v34 = vpack.c.bf16 %v85_v32, %v84_v31  ;;  %v68_v35 = vld [vmem:[#allocation5 + $0x50] sm:$0xff]  ;;  %v69_v36 = vld [vmem:[#allocation5 + $0x58] sm:$0xff] }
  0x41   :  { %240 = vmatprep.subr.bf16.mxu0 %v239_v14  ;;  %265 = vmatprep.subr.bf16.mxu1 %v239_v14  ;;  %v249_v33 = vpack.c.bf16 %v67_v30, %v66_v29  ;;  %v86_v37 = vld [vmem:[#allocation5 + $0xe0] sm:$0xff]  ;;  %v87_v38 = vld [vmem:[#allocation5 + $0xe8] sm:$0xff]  ;;  %v253_v39 = vpack.c.bf16 %v69_v36, %v68_v35  ;;  %v88_v43 = vld [vmem:[#allocation5 + $0xf0] sm:$0xff] }
  0x42   :  { %161 = vmatprep.mubr.f32.mxu0 %v55_v25  ;;  %v255_v40 = vpack.c.bf16 %v87_v38, %v86_v37  ;;  %v70_v41 = vld [vmem:[#allocation5 + $0x60] sm:$0xff]  ;;  %v71_v42 = vld [vmem:[#allocation5 + $0x68] sm:$0xff]  ;;  %v89_v44 = vld [vmem:[#allocation5 + $0xf8] sm:$0xff] }
  0x43   :  { %v257_v45 = vpack.c.bf16 %v71_v42, %v70_v41  ;;  %v259_v46 = vpack.c.bf16 %v89_v44, %v88_v43  ;;  %v72_v47 = vld [vmem:[#allocation5 + $0x70] sm:$0xff]  ;;  %v73_v48 = vld [vmem:[#allocation5 + $0x78] sm:$0xff]  ;;  %v54_v50 = vld [vmem:[#allocation2] sm:$0xff] }
  0x44   :  { %242 = vmatpush3.bf16.msra.mxu0 %v241_v19  ;;  %273 = vmatpush3.bf16.msra.mxu1 %v241_v19  ;;  %v261_v49 = vpack.c.bf16 %v73_v48, %v72_v47  ;;  %v56_v51 = vld [vmem:[#allocation2 + $0x10] sm:$0xff]  ;;  %v192_v54 = vld [vmem:[#allocation7] ss:$0 sm:$0xff] }
  0x45   :  { %244 = vmatprep.subr.bf16.mxu0 %v243_v20  ;;  %266 = vmatprep.subr.bf16.mxu1 %v243_v20 }
  0x48   :  { %246 = vmatpush3.bf16.msra.mxu0 %v245_v27  ;;  %274 = vmatpush3.bf16.msra.mxu1 %v245_v27 }
  0x49   :  { %248 = vmatprep.subr.bf16.mxu0 %v247_v28  ;;  %267 = vmatprep.subr.bf16.mxu1 %v247_v28 }
  0x4c   :  { %250 = vmatpush3.bf16.msra.mxu0 %v249_v33  ;;  %275 = vmatpush3.bf16.msra.mxu1 %v249_v33 }
  0x4d   :  { %252 = vmatprep.subr.bf16.mxu0 %v251_v34  ;;  %268 = vmatprep.subr.bf16.mxu1 %v251_v34 }
  0x50   :  { %254 = vmatpush3.bf16.msra.mxu0 %v253_v39  ;;  %276 = vmatpush3.bf16.msra.mxu1 %v253_v39 }
  0x51   :  { %256 = vmatprep.subr.bf16.mxu0 %v255_v40  ;;  %269 = vmatprep.subr.bf16.mxu1 %v255_v40 }
  0x54   :  { %258 = vmatpush3.bf16.msra.mxu0 %v257_v45  ;;  %277 = vmatpush3.bf16.msra.mxu1 %v257_v45 }
  0x55   :  { %260 = vmatprep.subr.bf16.mxu0 %v259_v46  ;;  %270 = vmatprep.subr.bf16.mxu1 %v259_v46 }
  0x58   :  { %262 = vmatpush3.bf16.msra.mxu0 %v261_v49  ;;  %278 = vmatpush3.bf16.msra.mxu1 %v261_v49 }
  0x5b   :  { %162 = vmatmul.mubr.f32.vlgmr.msra.gmra.mrb[0].mxu0 %v54_v50  ;;  %167 = vmatmul.mubr.f32.vlgmr.msra.gmra.mrb[0].mxu1 %v56_v51 }
 0x12e   :  { %v225_v52 = vpop.f32.mrb[0].mxu0  ;;  %v228_v53 = vpop.f32.mrb[0].mxu1 }
 0x12f   :  { %v226_v55 = vpop.f32.mrb[1].mxu0  ;;  %v229_v56 = vpop.f32.mrb[1].mxu1 }
 0x130   :  { %v227_v57 = vadd.f32 %v226_v55, %v225_v52  ;;  %v230_v58 = vadd.f32 %v229_v56, %v228_v53 }
 0x132   :  { %v164_v59 = vadd.f32 %v227_v57, %v192_v54  ;;  %v169_v60 = vadd.f32 %v230_v58, %v192_v54 }
 0x134   :  { %172 = vst [vmem:[#allocation8] sm:$0xff] %v164_v59  ;;  %173 = vst [vmem:[#allocation8 + $0x8] sm:$0xff] %v169_v60 }
 0x135   :  { %364 = shalt.err (!%p361_p0)
}
 0x136   :  { %s365_s30 = scalar_lea.hbm %s466_s3, 256 }
 0x137   :  { %p366_p1 = scmp.ne.s32.totalorder %s466_s3, %s365_s30  ;;  %p369_p2 = scmp.lt.u32.totalorder %s365_s30, %s466_s3 }
 0x139   :  { %p371_p3 = pnand %p369_p2, %p366_p1 }
 0x13b   :  { %374 = shalt.err (!%p371_p3)
}
 0x13c   :  { %185 = dma.vmem_to_hbm [thread:$0]  %s180_s26, 256, %s466_s3, [#allocation4], %s382_s22, %s382_s22, %s383_s23  }
 0x13d   :  { %379 = dma.done.wait [#allocation4], 256  }
 0x13e   :  { %380 = vsyncadd [#allocation4], 4294967040 }
 0x13f   :  { %189 = vsyncpa [#allocation3], 1 }
 0x140   :  { %190 = vsyncpa [#allocation6], 1 }
 0x141   :  { %191 = vsyncpa [#allocation4], 1 }

</bundles_post_ra>
